<compile_context>
chip_gen: v7x
topology: tpu7x:2x2x1
jax: 0.10.0
libtpu: 0.0.40
codegen_flags: <defaults>
</compile_context>

<pallas_src>
import math
from functools import partial

import jax
import jax.numpy as jnp
from jax.experimental import pallas as pl
from jax.experimental.pallas import tpu as pltpu

N_EMBD = 32  # config.n_embd for the toy test


def _gelu_tanh(x):
    # PyTorch nn.GELU(approximate='tanh')
    c = math.sqrt(2.0 / math.pi)
    return 0.5 * x * (1.0 + jnp.tanh(c * (x + 0.044715 * x * x * x)))


# ----------------------- fused Pallas kernel -----------------------
def mlp_kernel(x_ref, wfc_ref, bfc_ref, wproj_ref, bproj_ref, out_ref,
               *, use_bf16_matmul: bool):
    """x_ref: (TM, C) slab.  Weights are (in, out).  out_ref: (TM, C)."""
    x = x_ref[...]                                   # (TM, C)
    wfc = wfc_ref[...]                               # (C, 4C)
    wproj = wproj_ref[...]                           # (4C, C)

    if use_bf16_matmul:
        # MXU-operand cast only; accumulation and GELU stay f32 (v5e-safe).
        x_mm, wfc_mm = x.astype(jnp.bfloat16), wfc.astype(jnp.bfloat16)
    else:
        x_mm, wfc_mm = x, wfc

    h = jnp.dot(x_mm, wfc_mm,
                preferred_element_type=jnp.float32) + bfc_ref[...]   # (TM, 4C) f32
    h = _gelu_tanh(h)                                                # f32

    if use_bf16_matmul:
        h_mm, wproj_mm = h.astype(jnp.bfloat16), wproj.astype(jnp.bfloat16)
    else:
        h_mm, wproj_mm = h, wproj

    y = jnp.dot(h_mm, wproj_mm,
                preferred_element_type=jnp.float32) + bproj_ref[...]  # (TM, C)
    out_ref[...] = y.astype(out_ref.dtype)


# ----------------------- wrapper -----------------------
def mlp_forward(x, w_fc, b_fc, w_proj, b_proj, *,
                block_m=None, use_bf16_matmul=False):
    """x: (B, T, C). Weights pre-transposed to (in, out). Returns (B, T, C).

    block_m=None and small B*T  -> single-shot, everything VMEM-resident.
    block_m=TM (multiple of 8)  -> row-tiled grid: weights resident, (TM, C)
                                   input/output tiles double-buffered,
                                   "parallel" row grid (uses both v7x TCs).
    """
    B, T, C = x.shape
    N = B * T
    x2 = x.reshape(N, C)  # fold batch+seq into the sublane dim

    kern = partial(mlp_kernel, use_bf16_matmul=use_bf16_matmul)

    # ---------------- single-shot path (toy / small N) ----------------
    if block_m is None and N <= 512:
        vmem = pltpu.MemorySpace.VMEM
        out = pl.pallas_call(
            kern,
            out_shape=jax.ShapeDtypeStruct((N, C), x.dtype),
            in_specs=[pl.BlockSpec(memory_space=vmem)] * 5,  # whole arrays in VMEM
            out_specs=pl.BlockSpec(memory_space=vmem),
        )(x2, w_fc, b_fc, w_proj, b_proj)
        return out.reshape(B, T, C)

    # ---------------- row-tiled scaling path ----------------
    tm = block_m if block_m is not None else 256
    tm = max(8, (tm // 8) * 8)            # sublane-aligned tile
    if N % tm != 0:
        # TODO(synk): handle ragged last tile via masking; toy/test shapes divide evenly.
        tm = math.gcd(N, tm) if math.gcd(N, tm) % 8 == 0 else 8
    grid = (N // tm,)

    H = w_fc.shape[1]                     # 4*C
    itemsize = jnp.dtype(x.dtype).itemsize
    weights_bytes = (w_fc.size + b_fc.size + w_proj.size + b_proj.size) * itemsize
    tiles_bytes = 2 * 2 * tm * C * itemsize        # double-buffered in + out tiles
    hidden_bytes = 2 * tm * H * 4                  # f32 hidden + headroom
    # Budget against v7x's 64 MiB physical VMEM (use <= ~48 MiB).
    vmem_limit = min(48 << 20, max(16 << 20, 2 * (weights_bytes + tiles_bytes + hidden_bytes)))

    out = pl.pallas_call(
        kern,
        out_shape=jax.ShapeDtypeStruct((N, C), x.dtype),
        grid_spec=pltpu.PrefetchScalarGridSpec(
            num_scalar_prefetch=0,
            grid=grid,
            in_specs=[
                pl.BlockSpec((tm, C), lambda i: (i, 0)),       # x rows: tiled
                pl.BlockSpec((C, H), lambda i: (0, 0)),        # w_fc: resident
                pl.BlockSpec((1, H), lambda i: (0, 0)),        # b_fc: resident
                pl.BlockSpec((H, C), lambda i: (0, 0)),        # w_proj: resident
                pl.BlockSpec((1, C), lambda i: (0, 0)),        # b_proj: resident
            ],
            out_specs=pl.BlockSpec((tm, C), lambda i: (i, 0)),
        ),
        compiler_params=pltpu.CompilerParams(
            dimension_semantics=("parallel",),                 # use both v7x TCs
            vmem_limit_bytes=int(vmem_limit),
        ),
    )(x2, w_fc, b_fc, w_proj, b_proj)
    return out.reshape(B, T, C)


# ----------------------- plain-JAX reference -----------------------
def mlp_ref(x, w_fc, b_fc, w_proj, b_proj):
    h = jnp.dot(x, w_fc) + b_fc[0]
    h = _gelu_tanh(h)
    return jnp.dot(h, w_proj) + b_proj[0]


# ----------------------- main -----------------------
if __name__ == "__main__":
    key = jax.random.PRNGKey(0)
    kx, k1, k2, kx2 = jax.random.split(key, 4)

    B, T, C = 2, 8, N_EMBD

    x = jax.random.normal(kx, (B, T, C), dtype=jnp.float32)
    # nn.Linear weights, pre-transposed to (in_features, out_features)
    w_fc = (0.02 * jax.random.normal(k1, (C, 4 * C))).astype(jnp.float32)
    b_fc = jnp.zeros((1, 4 * C), jnp.float32)
    w_proj = (0.02 * jax.random.normal(k2, (4 * C, C))).astype(jnp.float32)
    b_proj = jnp.zeros((1, C), jnp.float32)

    # --- single-shot path (toy size) ---
    y = mlp_forward(x, w_fc, b_fc, w_proj, b_proj)
    y = jax.block_until_ready(y)
    y_ref = mlp_ref(x, w_fc, b_fc, w_proj, b_proj)
    assert y.shape == (B, T, C)
    assert jnp.all(jnp.isfinite(y))
    assert jnp.allclose(y, y_ref, atol=1e-3, rtol=1e-3)

    # --- row-tiled scaling path (same kernel body, gridded) ---
    B2, T2 = 4, 32                                  # N = 128 rows
    x_big = jax.random.normal(kx2, (B2, T2, C), dtype=jnp.float32)
    y_big = mlp_forward(x_big, w_fc, b_fc, w_proj, b_proj, block_m=64)
    y_big = jax.block_until_ready(y_big)
    y_big_ref = mlp_ref(x_big, w_fc, b_fc, w_proj, b_proj)
    assert y_big.shape == (B2, T2, C)
    assert jnp.all(jnp.isfinite(y_big))
    assert jnp.allclose(y_big, y_big_ref, atol=1e-3, rtol=1e-3)

    print("KERNEL_OK")
</pallas_src>

<mosaic_0001>
module attributes {stable_mosaic.version = 11 : i64} {
  func.func @mlp_kernel(%arg0: memref<16x32xf32, #tpu.memory_space<vmem>>, %arg1: memref<32x128xf32, #tpu.memory_space<vmem>>, %arg2: memref<1x128xf32, #tpu.memory_space<vmem>>, %arg3: memref<128x32xf32, #tpu.memory_space<vmem>>, %arg4: memref<1x32xf32, #tpu.memory_space<vmem>>, %arg5: memref<16x32xf32, #tpu.memory_space<vmem>>) attributes {dimension_semantics = [], scalar_prefetch = 0 : i64, scratch_operands = 0 : i64, tpu.core_type = #tpu.core_type<tc>} {
    %c0 = arith.constant 0 : index
    %c0_0 = arith.constant 0 : index
    %0 = vector.load %arg0[%c0, %c0_0] : memref<16x32xf32, #tpu.memory_space<vmem>>, vector<16x32xf32>
    %c0_1 = arith.constant 0 : index
    %c0_2 = arith.constant 0 : index
    %1 = vector.load %arg1[%c0_1, %c0_2] : memref<32x128xf32, #tpu.memory_space<vmem>>, vector<32x128xf32>
    %c0_3 = arith.constant 0 : index
    %c0_4 = arith.constant 0 : index
    %2 = vector.load %arg3[%c0_3, %c0_4] : memref<128x32xf32, #tpu.memory_space<vmem>>, vector<128x32xf32>
    %cst = arith.constant dense<0.000000e+00> : vector<16x128xf32>
    %3 = tpu.matmul %0, %1, %cst {dimension_numbers = #tpu.dot_dimension_numbers<[1], [0], [0], [1], [0, 0, 1, 1], [], []>} : vector<16x32xf32>, vector<32x128xf32>, vector<16x128xf32> -> vector<16x128xf32>
    %c0_5 = arith.constant 0 : index
    %c0_6 = arith.constant 0 : index
    %4 = vector.load %arg2[%c0_5, %c0_6] : memref<1x128xf32, #tpu.memory_space<vmem>>, vector<1x128xf32>
    %5 = vector.broadcast %4 : vector<1x128xf32> to vector<16x128xf32>
    %6 = arith.addf %3, %5 : vector<16x128xf32>
    %cst_7 = arith.constant 5.000000e-01 : f32
    %7 = vector.broadcast %cst_7 : f32 to vector<16x128xf32>
    %8 = arith.mulf %7, %6 : vector<16x128xf32>
    %cst_8 = arith.constant 4.471500e-02 : f32
    %9 = vector.broadcast %cst_8 : f32 to vector<16x128xf32>
    %10 = arith.mulf %9, %6 : vector<16x128xf32>
    %11 = arith.mulf %10, %6 : vector<16x128xf32>
    %12 = arith.mulf %11, %6 : vector<16x128xf32>
    %13 = arith.addf %6, %12 : vector<16x128xf32>
    %cst_9 = arith.constant 0.797884583 : f32
    %14 = vector.broadcast %cst_9 : f32 to vector<16x128xf32>
    %15 = arith.mulf %14, %13 : vector<16x128xf32>
    %16 = math.tanh %15 : vector<16x128xf32>
    %cst_10 = arith.constant 1.000000e+00 : f32
    %17 = vector.broadcast %cst_10 : f32 to vector<16x128xf32>
    %18 = arith.addf %17, %16 : vector<16x128xf32>
    %19 = arith.mulf %8, %18 : vector<16x128xf32>
    %cst_11 = arith.constant dense<0.000000e+00> : vector<16x32xf32>
    %20 = tpu.matmul %19, %2, %cst_11 {dimension_numbers = #tpu.dot_dimension_numbers<[1], [0], [0], [1], [0, 0, 1, 1], [], []>} : vector<16x128xf32>, vector<128x32xf32>, vector<16x32xf32> -> vector<16x32xf32>
    %c0_12 = arith.constant 0 : index
    %c0_13 = arith.constant 0 : index
    %21 = vector.load %arg4[%c0_12, %c0_13] : memref<1x32xf32, #tpu.memory_space<vmem>>, vector<1x32xf32>
    %22 = vector.broadcast %21 : vector<1x32xf32> to vector<16x32xf32>
    %23 = arith.addf %20, %22 : vector<16x32xf32>
    %c0_14 = arith.constant 0 : index
    %c0_15 = arith.constant 0 : index
    %24 = vector.load %arg5[%c0_14, %c0_15] : memref<16x32xf32, #tpu.memory_space<vmem>>, vector<16x32xf32>
    tpu.vector_store %arg5[%c0_14, %c0_15], %23 {strides = array<i32>} : memref<16x32xf32, #tpu.memory_space<vmem>>, vector<16x32xf32>,
    return
  }
}

</mosaic_0001>

<bundles_post_ra>
// kernel: tpu_custom_call.1
= control target key start
LH: loop header
LB: loop body
LE: loop exit
PB: predicated region body
PF: predicated region fallthrough
CT: control target
= control target key end

     0   :  { %vm50_vm0 = vcmask 261120   ;;  %s516_s0 = inlined_call_operand.vmem [shape: f32[16,32], index: 0, kind: input, shape index: {}]   ;;  %s517_s1 = inlined_call_operand.vmem [shape: f32[32,128], index: 1, kind: input, shape index: {}]   ;;  %s518_s2 = inlined_call_operand.vmem [shape: f32[1,128], index: 2, kind: input, shape index: {}]   ;;  %s519_s3 = inlined_call_operand.vmem [shape: f32[128,32], index: 3, kind: input, shape index: {}]   ;;  %s520_s4 = inlined_call_operand.vmem [shape: f32[1,32], index: 4, kind: input, shape index: {}]   ;;  %s521_s5 = inlined_call_operand.hbm [shape: f32[16,32], index: 5, kind: output, shape index: {}]  }
   0x1   :  { %v23_v0 = vld [vmem:[%s517_s1] sm:$0xff]  ;;  %v24_v1 = vld [vmem:[%s517_s1 + $0x8] sm:$0xff]  ;;  %v25_v2 = vld [vmem:[%s517_s1 + $0x10] sm:$0xff] }
   0x2   :  { %v324_v3 = vpack.c.bf16 %v24_v1, %v23_v0  ;;  %v26_v4 = vld [vmem:[%s517_s1 + $0x18] sm:$0xff]  ;;  %v21_v5 = vld [vmem:[%s516_s0] sm:$0xff]  ;;  %v28_v8 = vld [vmem:[%s519_s3 + $0x8] sm:$0xff] }
   0x3   :  { %v328_v6 = vpack.c.bf16 %v26_v4, %v25_v2  ;;  %286 = vmatprep.mubr.msk.f32.mxu0 %vm50_vm0, %v21_v5  ;;  %v27_v7 = vld [vmem:[%s519_s3] sm:$0xff] }
   0x4   :  { %10 = vsyncpa [#allocation3], 0  ;;  %325 = vmatprep.subr.bf16.mxu0 %v324_v3  ;;  %v332_v9 = vpack.c.bf16 %v28_v8, %v27_v7  ;;  %v22_v10 = vld [vmem:[%s516_s0 + $0x8] sm:$0xff]  ;;  %v29_v11 = vld [vmem:[%s519_s3 + $0x10] sm:$0xff]  ;;  %s395_s11 = smov [#allocation2]  }
   0x5   :  { %327 = vmatpush3.bf16.msra.mxu0 %v324_v3  ;;  %v30_v12 = vld [vmem:[%s519_s3 + $0x18] sm:$0xff]  ;;  %v31_v14 = vld [vmem:[%s519_s3 + $0x20] sm:$0xff]  ;;  %v32_v15 = vld [vmem:[%s519_s3 + $0x28] sm:$0xff]  ;;  %s239_s12 = sshll.u32 %s395_s11, 4  ;;  %s240_s12 = int_to_ptr.vmem [resolvable:$true] %s239_s12 }
   0x6   :  { %329 = vmatprep.subr.bf16.mxu0 %v328_v6  ;;  %333 = vmatprep.subr.bf16.mxu1 %v332_v9  ;;  %v336_v13 = vpack.c.bf16 %v30_v12, %v29_v11  ;;  %v340_v16 = vpack.c.bf16 %v32_v15, %v31_v14  ;;  %v33_v17 = vld [vmem:[%s519_s3 + $0x30] sm:$0xff]  ;;  %v34_v18 = vld [vmem:[%s519_s3 + $0x38] sm:$0xff]  ;;  %v35_v19 = vld [vmem:[%s519_s3 + $0x40] sm:$0xff]  ;;  %s371_s13 = scalar_lea.vmem %s240_s12, 256  ;;  %p376_p1 = scmp.lt.s32.totalorder %s240_s12, %s240_s12 }
   0x7   :  { %335 = vmatpush3.bf16.msra.mxu1 %v332_v9  ;;  %v344_v20 = vpack.c.bf16 %v34_v18, %v33_v17  ;;  %v36_v21 = vld [vmem:[%s519_s3 + $0x48] sm:$0xff]  ;;  %v37_v23 = vld [vmem:[%s519_s3 + $0x50] sm:$0xff]  ;;  %v38_v24 = vld [vmem:[%s519_s3 + $0x58] sm:$0xff]  ;;  %p372_p0 = scmp.ne.s32.totalorder %s240_s12, %s371_s13  ;;  %p377_p2 = scmp.lt.s32.totalorder %s371_s13, %s371_s13 }
   0x8   :  { %337 = vmatprep.subr.bf16.mxu1 %v336_v13  ;;  %v348_v22 = vpack.c.bf16 %v36_v21, %v35_v19  ;;  %v352_v25 = vpack.c.bf16 %v38_v24, %v37_v23  ;;  %v39_v26 = vld [vmem:[%s519_s3 + $0x60] sm:$0xff]  ;;  %v40_v27 = vld [vmem:[%s519_s3 + $0x68] sm:$0xff]  ;;  %v41_v29 = vld [vmem:[%s519_s3 + $0x70] sm:$0xff] }
   0x9   :  { %331 = vmatpush3.bf16.msra.mxu0 %v328_v6  ;;  %v356_v28 = vpack.c.bf16 %v40_v27, %v39_v26  ;;  %v42_v30 = vld [vmem:[%s519_s3 + $0x78] sm:$0xff]  ;;  %v250_v32 = vld [vmem:[%s518_s2] ss:$0 sm:$0xff]  ;;  %p378_p3 = por %p377_p2, %p376_p1 }
   0xa   :  { %v360_v31 = vpack.c.bf16 %v42_v30, %v41_v29  ;;  %v253_v55 = vld [vmem:[%s520_s4] ss:$0 sm:$0xff] }
   0xb   :  { %339 = vmatpush3.bf16.msra.mxu1 %v336_v13  ;;  %p379_p4 = pnand %p378_p3, %p372_p0 }
   0xc   :  { %287 = vmatmul.mubr.msk.f32.vlgmr.msra.gmra.mrb[0].mxu0 %vm50_vm0, %v22_v10  ;;  %341 = vmatprep.subr.bf16.mxu1 %v340_v16 }
   0xf   :  { %343 = vmatpush3.bf16.msra.mxu1 %v340_v16 }
  0x10   :  { %345 = vmatprep.subr.bf16.mxu1 %v344_v20 }
  0x13   :  { %347 = vmatpush3.bf16.msra.mxu1 %v344_v20 }
  0x14   :  { %349 = vmatprep.subr.bf16.mxu1 %v348_v22 }
  0x17   :  { %351 = vmatpush3.bf16.msra.mxu1 %v348_v22 }
  0x18   :  { %353 = vmatprep.subr.bf16.mxu1 %v352_v25 }
  0x1b   :  { %355 = vmatpush3.bf16.msra.mxu1 %v352_v25 }
  0x1c   :  { %357 = vmatprep.subr.bf16.mxu1 %v356_v28 }
  0x1f   :  { %359 = vmatpush3.bf16.msra.mxu1 %v356_v28 }
  0x20   :  { %361 = vmatprep.subr.bf16.mxu1 %v360_v31 }
  0x23   :  { %363 = vmatpush3.bf16.msra.mxu1 %v360_v31 }
  0xdf   :  { %v288_v33 = vpop.f32.mrb[0].mxu0 }
  0xe0   :  { %v129_v34 = vadd.f32 %v288_v33, %v250_v32  ;;  %v123_v35 = vpop.f32.mrb[1].mxu0 }
  0xe1   :  { %v124_v36 = vadd.f32 %v250_v32, %v123_v35 }
  0xe2   :  { %v135_v37 = vmul.f32 0.044715, %v129_v34  ;;  %v133_v52 = vmul.f32 0.5, %v129_v34 }
  0xe3   :  { %v134_v38 = vmul.f32 0.044715, %v124_v36  ;;  %v132_v50 = vmul.f32 0.5, %v124_v36 }
  0xe4   :  { %v137_v39 = vmul.f32 %v135_v37, %v129_v34 }
  0xe5   :  { %v136_v40 = vmul.f32 %v134_v38, %v124_v36 }
  0xe6   :  { %v139_v41 = vmul.f32 %v137_v39, %v129_v34 }
  0xe7   :  { %v138_v42 = vmul.f32 %v136_v40, %v124_v36 }
  0xe8   :  { %v141_v43 = vadd.f32 %v139_v41, %v129_v34 }
  0xe9   :  { %v140_v44 = vadd.f32 %v138_v42, %v124_v36 }
  0xea   :  { %v143_v45 = vmul.f32 0.7978846, %v141_v43 }
  0xeb   :  { %v142_v46 = vmul.f32 0.7978846, %v140_v44 }
  0xec   :  { %367 = vtanh.f32 %v143_v45 }
  0xed   :  { %369 = vtanh.f32 %v142_v46 }
  0xf6   :  { %v368_v47 = vpop.eup %367 }
  0xf7   :  { %v370_v48 = vpop.eup %369  ;;  %v147_v49 = vadd.f32 1.0, %v368_v47 }
  0xf8   :  { %v146_v51 = vadd.f32 1.0, %v370_v48 }
  0xf9   :  { %v149_v54 = vmul.f32 %v147_v49, %v133_v52 }
  0xfa   :  { %v148_v53 = vmul.f32 %v146_v51, %v132_v50 }
  0xfc   :  { %321 = vmatprep.mubr.f32.mxu1 %v148_v53 }
  0xfd   :  { %322 = vmatmul.mubr.f32.vlgmr.msra.gmra.mrb[0].mxu1 %v149_v54 }
 0x1d0   :  { %v323_v56 = vpop.f32.mrb[0].mxu1 }
 0x1d1   :  { %v229_v57 = vadd.f32 %v323_v56, %v253_v55  ;;  %v223_v58 = vpop.f32.mrb[1].mxu1 }
 0x1d2   :  { %v224_v59 = vadd.f32 %v253_v55, %v223_v58 }
 0x1d3   :  { %233 = vst.msk [vmem:[#allocation2 + $0x8] sm:$0xff] %vm50_vm0, %v229_v57 }
 0x1d4   :  { %232 = vst.msk [vmem:[#allocation2] sm:$0xff] %vm50_vm0, %v224_v59 }
 0x1d5   :  { %382 = shalt.err (!%p379_p4)
}
 0x1d6   :  { %s383_s15 = scalar_lea.hbm %s521_s5, 256 }
 0x1d7   :  { %p384_p5 = scmp.ne.s32.totalorder %s521_s5, %s383_s15  ;;  %p387_p6 = scmp.lt.u32.totalorder %s383_s15, %s521_s5 }
 0x1d9   :  { %p389_p7 = pnand %p387_p6, %p384_p5 }
 0x1db   :  { %392 = shalt.err (!%p389_p7)
}
 0x1dc   :  { %s396_s19 = smov 128   ;;  %s397_s20 = smov 8  }
 0x1dd   :  { %245 = dma.vmem_to_hbm [thread:$0]  %s240_s12, 256, %s521_s5, [#allocation3], %s396_s19, %s396_s19, %s397_s20  }
 0x1de   :  { %393 = dma.done.wait [#allocation3], 256  }
 0x1df   :  { %394 = vsyncadd [#allocation3], 4294967040 }
 0x1e0   :  { %249 = vsyncpa [#allocation3], 1 }

</bundles_post_ra>
